<compile_context>
chip_gen: v7x
topology: tpu7x:2x2x1
jax: 0.10.0
libtpu: 0.0.40
codegen_flags: <defaults>
</compile_context>

<pallas_src>
import functools

import jax
import jax.numpy as jnp
from jax.experimental import pallas as pl
from jax.experimental.pallas import tpu as pltpu


IN_FEATURES = 28 * 28       # 784, fixed by Linear(28*28, 256)
HIDDEN = 256
NUM_CLASSES = 10
PADDED_CLASSES = 128        # lane-dense output width
NEG_PAD_BIAS = -1e30        # exp(-1e30 - m) == 0 -> pad classes get prob 0


def _mlp_softmax_kernel(x_ref, w1_ref, b1_ref, w2_ref, b2_ref, o_ref):
    # x_ref : (TB, 784) f32/bf16   w1_ref: (784, 256) bf16   b1_ref: (1, 256) f32
    # w2_ref: (256, 128) bf16      b2_ref: (1, 128)   f32    o_ref : (TB, 128) bf16
    x = x_ref[...].astype(jnp.bfloat16)      # no-op if the producer already gave bf16

    # Linear(784, 256) + ReLU: bf16 MXU matmul, f32 accumulate + f32 elementwise.
    h = jnp.dot(x, w1_ref[...], preferred_element_type=jnp.float32) + b1_ref[...]
    h = jnp.maximum(h, 0.0)

    # Linear(256, 10) padded to 128 output lanes; bf16 MXU matmul (native rate
    # on v5e), f32 accumulate. Pad cols: zero W, -1e30 bias.
    logits = (jnp.dot(h.astype(jnp.bfloat16), w2_ref[...],
                      preferred_element_type=jnp.float32)
              + b2_ref[...])

    # Numerically stable softmax over the 128 lanes (f32). Pad lanes contribute
    # exp(-1e30 - m) == 0, so real-class probabilities are unchanged.
    m = jnp.max(logits, axis=-1, keepdims=True)
    e = jnp.exp(logits - m)
    denom = jnp.sum(e, axis=-1, keepdims=True)
    o_ref[...] = (e * pl.reciprocal(denom, approx=True)).astype(o_ref.dtype)


def prepare_params(w1, b1, w2, b2):
    """Convert f32 (in, out)-layout params to kernel-ready layout/dtypes.

    w1: (784, 256)  b1: (256,)  w2: (256, 10)  b2: (10,)
    (Already transposed relative to PyTorch's (out, in) storage.)
    """
    w1_bf16 = w1.astype(jnp.bfloat16)                      # halves dominant W1 load
    b1_2d = b1.reshape(1, HIDDEN).astype(jnp.float32)
    w2_pad = (jnp.zeros((HIDDEN, PADDED_CLASSES), jnp.bfloat16)
              .at[:, :NUM_CLASSES].set(w2.astype(jnp.bfloat16)))
    b2_pad = (jnp.full((1, PADDED_CLASSES), NEG_PAD_BIAS, jnp.float32)
              .at[0, :NUM_CLASSES].set(b2.astype(jnp.float32)))
    return w1_bf16, b1_2d, w2_pad, b2_pad


def _round_up(x, m):
    return ((x + m - 1) // m) * m


@functools.partial(jax.jit, static_argnames=("block_b",))
def feed_forward_net(x_nchw, w1_bf16, b1_2d, w2_pad, b2_pad, block_b=1024):
    """Forward pass. x_nchw: (B, 1, 28, 28) f32 or bf16 -> (B, 10) f32 probs."""
    B = x_nchw.shape[0]
    # nn.Flatten() on NCHW (row-major). Keeps the producer's dtype: no
    # wrapper-side astype (that would be a separate HBM-read/write XLA pass).
    x_flat = x_nchw.reshape(B, IN_FEATURES)

    # Batch tile: up to 1024 rows (amortizes per-grid-step overhead), capped so
    # the grid keeps >=4 steps when B allows, so v7x's two TensorCores both
    # engage on the "parallel" axis. Always a multiple of 8 (sublane).
    tb = min(block_b, max(8, _round_up(-(-B // 4), 8)))
    grid = (pl.cdiv(B, tb),)

    out_padded = pl.pallas_call(
        _mlp_softmax_kernel,
        out_shape=jax.ShapeDtypeStruct((B, PADDED_CLASSES), jnp.bfloat16),
        grid=grid,
        in_specs=[
            # x: tiled along batch -> DMA double-buffered / overlapped with MXU.
            pl.BlockSpec((tb, IN_FEATURES), lambda i: (i, 0)),
            # Weights/biases: constant block index -> stay resident in VMEM.
            pl.BlockSpec((IN_FEATURES, HIDDEN), lambda i: (0, 0)),
            pl.BlockSpec((1, HIDDEN), lambda i: (0, 0)),
            pl.BlockSpec((HIDDEN, PADDED_CLASSES), lambda i: (0, 0)),
            pl.BlockSpec((1, PADDED_CLASSES), lambda i: (0, 0)),
        ],
        out_specs=pl.BlockSpec((tb, PADDED_CLASSES), lambda i: (i, 0)),
        compiler_params=pltpu.CompilerParams(
            dimension_semantics=("parallel",)),     # 2x on v7x dual-TC
    )(x_flat, w1_bf16, b1_2d, w2_pad, b2_pad)

    # Tiny (B, 10) slice + cast back to f32 to match the PyTorch module output.
    return out_padded[:, :NUM_CLASSES].astype(jnp.float32)


def _init_params(key):
    """Deterministic init mimicking PyTorch Linear default (uniform +-1/sqrt(fan_in))."""
    k1, k2, k3, k4 = jax.random.split(key, 4)
    lim1 = 1.0 / jnp.sqrt(IN_FEATURES)
    lim2 = 1.0 / jnp.sqrt(HIDDEN)
    # Stored as (in, out) — transposed relative to PyTorch's (out, in).
    w1 = jax.random.uniform(k1, (IN_FEATURES, HIDDEN), jnp.float32, -lim1, lim1)
    b1 = jax.random.uniform(k2, (HIDDEN,), jnp.float32, -lim1, lim1)
    w2 = jax.random.uniform(k3, (HIDDEN, NUM_CLASSES), jnp.float32, -lim2, lim2)
    b2 = jax.random.uniform(k4, (NUM_CLASSES,), jnp.float32, -lim2, lim2)
    return w1, b1, w2, b2


def _reference(x_nchw, w1, b1, w2, b2):
    x = x_nchw.reshape(x_nchw.shape[0], -1).astype(jnp.float32)
    h = jnp.maximum(x @ w1 + b1, 0.0)
    logits = h @ w2 + b2
    return jax.nn.softmax(logits, axis=1)


if __name__ == "__main__":
    key = jax.random.PRNGKey(0)
    k_x, k_p = jax.random.split(key)

    w1, b1, w2, b2 = _init_params(k_p)
    params = prepare_params(w1, b1, w2, b2)

    # (1) Small MNIST-like f32 batch, exactly as the PyTorch module sees it:
    #     (B=2, C=1, H=28, W=28).
    x = jax.random.normal(k_x, (2, 1, 28, 28), jnp.float32)
    out = jax.block_until_ready(feed_forward_net(x, *params))
    ref = _reference(x, w1, b1, w2, b2)
    assert out.shape == (2, NUM_CLASSES)
    # bf16 weights/output + approx reciprocal -> loosened tolerances.
    assert jnp.allclose(jnp.sum(out, axis=1), 1.0, atol=1e-2)
    assert jnp.allclose(out, ref, atol=2e-2), float(jnp.max(jnp.abs(out - ref)))

    # (2) Larger batch with producer-supplied bf16 activations (halves the
    #     dominant x HBM read; the cast happens at the data source, not in the
    #     kernel wrapper). Exercises a multi-step grid with resident weights
    #     and a partial final block.
    x_big = jax.random.normal(k_x, (300, 1, 28, 28), jnp.float32)
    x_big_bf16 = x_big.astype(jnp.bfloat16)          # "producer" emits bf16
    out_big = jax.block_until_ready(feed_forward_net(x_big_bf16, *params))
    ref_big = _reference(x_big_bf16, w1, b1, w2, b2)
    assert out_big.shape == (300, NUM_CLASSES)
    assert jnp.allclose(out_big, ref_big, atol=2e-2), float(
        jnp.max(jnp.abs(out_big - ref_big)))

    print("KERNEL_OK")
</pallas_src>

<mosaic_0001>
module attributes {stable_mosaic.version = 11 : i64} {
  func.func @_mlp_softmax_kernel(%arg0: i32, %arg1: memref<8x784xf32, #tpu.memory_space<vmem>>, %arg2: memref<784x256xbf16, #tpu.memory_space<vmem>>, %arg3: memref<1x256xf32, #tpu.memory_space<vmem>>, %arg4: memref<256x128xbf16, #tpu.memory_space<vmem>>, %arg5: memref<1x128xf32, #tpu.memory_space<vmem>>, %arg6: memref<8x128xbf16, #tpu.memory_space<vmem>>) attributes {dimension_semantics = [#tpu.dimension_semantics<parallel>], iteration_bounds = array<i64: 1>, scalar_prefetch = 0 : i64, scratch_operands = 0 : i64, tpu.core_type = #tpu.core_type<tc>, window_params = [{transform_indices = @transform_0, window_bounds = array<i64: 8, 784>}, {pipeline_mode = #tpu.pipeline_mode<synchronous>, transform_indices = @transform_1, window_bounds = array<i64: 784, 256>}, {pipeline_mode = #tpu.pipeline_mode<synchronous>, transform_indices = @transform_2, window_bounds = array<i64: 1, 256>}, {pipeline_mode = #tpu.pipeline_mode<synchronous>, transform_indices = @transform_3, window_bounds = array<i64: 256, 128>}, {pipeline_mode = #tpu.pipeline_mode<synchronous>, transform_indices = @transform_4, window_bounds = array<i64: 1, 128>}, {transform_indices = @transform_5, window_bounds = array<i64: 8, 128>}]} {
    %c0 = arith.constant 0 : index
    %c0_0 = arith.constant 0 : index
    %0 = vector.load %arg1[%c0, %c0_0] : memref<8x784xf32, #tpu.memory_space<vmem>>, vector<8x784xf32>
    %1 = arith.truncf %0 : vector<8x784xf32> to vector<8x784xbf16>
    %c0_1 = arith.constant 0 : index
    %c0_2 = arith.constant 0 : index
    %2 = vector.load %arg2[%c0_1, %c0_2] : memref<784x256xbf16, #tpu.memory_space<vmem>>, vector<784x256xbf16>
    %cst = arith.constant dense<0.000000e+00> : vector<8x256xf32>
    %3 = tpu.matmul %1, %2, %cst {dimension_numbers = #tpu.dot_dimension_numbers<[1], [0], [0], [1], [0, 0, 1, 1], [], []>} : vector<8x784xbf16>, vector<784x256xbf16>, vector<8x256xf32> -> vector<8x256xf32>
    %c0_3 = arith.constant 0 : index
    %c0_4 = arith.constant 0 : index
    %4 = vector.load %arg3[%c0_3, %c0_4] : memref<1x256xf32, #tpu.memory_space<vmem>>, vector<1x256xf32>
    %5 = vector.broadcast %4 : vector<1x256xf32> to vector<8x256xf32>
    %6 = arith.addf %3, %5 : vector<8x256xf32>
    %cst_5 = arith.constant 0.000000e+00 : f32
    %7 = vector.broadcast %cst_5 : f32 to vector<8x256xf32>
    %8 = arith.maximumf %6, %7 : vector<8x256xf32>
    %9 = arith.truncf %8 : vector<8x256xf32> to vector<8x256xbf16>
    %c0_6 = arith.constant 0 : index
    %c0_7 = arith.constant 0 : index
    %10 = vector.load %arg4[%c0_6, %c0_7] : memref<256x128xbf16, #tpu.memory_space<vmem>>, vector<256x128xbf16>
    %cst_8 = arith.constant dense<0.000000e+00> : vector<8x128xf32>
    %11 = tpu.matmul %9, %10, %cst_8 {dimension_numbers = #tpu.dot_dimension_numbers<[1], [0], [0], [1], [0, 0, 1, 1], [], []>} : vector<8x256xbf16>, vector<256x128xbf16>, vector<8x128xf32> -> vector<8x128xf32>
    %c0_9 = arith.constant 0 : index
    %c0_10 = arith.constant 0 : index
    %12 = vector.load %arg5[%c0_9, %c0_10] : memref<1x128xf32, #tpu.memory_space<vmem>>, vector<1x128xf32>
    %13 = vector.broadcast %12 : vector<1x128xf32> to vector<8x128xf32>
    %14 = arith.addf %11, %13 : vector<8x128xf32>
    %cst_11 = arith.constant dense<0xFF800000> : vector<8xf32>
    %15 = vector.multi_reduction <maximumf>, %14, %cst_11 [1] : vector<8x128xf32> to vector<8xf32>
    %16 = vector.shape_cast %15 : vector<8xf32> to vector<8x1xf32>
    %17 = vector.broadcast %16 : vector<8x1xf32> to vector<8x128xf32>
    %18 = arith.subf %14, %17 : vector<8x128xf32>
    %19 = math.exp %18 : vector<8x128xf32>
    %cst_12 = arith.constant dense<0.000000e+00> : vector<8xf32>
    %20 = vector.multi_reduction <add>, %19, %cst_12 [1] : vector<8x128xf32> to vector<8xf32>
    %21 = vector.shape_cast %20 : vector<8xf32> to vector<8x1xf32>
    %22 = tpu.reciprocal %21 {approx = true} : vector<8x1xf32> -> vector<8x1xf32>
    %23 = vector.broadcast %22 : vector<8x1xf32> to vector<8x128xf32>
    %24 = arith.mulf %19, %23 : vector<8x128xf32>
    %25 = arith.truncf %24 : vector<8x128xf32> to vector<8x128xbf16>
    %c0_13 = arith.constant 0 : index
    %c0_14 = arith.constant 0 : index
    %26 = vector.load %arg6[%c0_13, %c0_14] : memref<8x128xbf16, #tpu.memory_space<vmem>>, vector<8x128xbf16>
    tpu.vector_store %arg6[%c0_13, %c0_14], %25 {strides = array<i32>} : memref<8x128xbf16, #tpu.memory_space<vmem>>, vector<8x128xbf16>,
    return
  }
  func.func @transform_0(%arg0: i32) -> (i32, i32) {
    %c0_i32 = arith.constant 0 : i32
    %c0_i32_0 = arith.constant 0 : i32
    return %arg0, %c0_i32 : i32, i32
  }
  func.func @transform_1(%arg0: i32) -> (i32, i32) {
    %c0_i32 = arith.constant 0 : i32
    %c0_i32_0 = arith.constant 0 : i32
    %c0_i32_1 = arith.constant 0 : i32
    return %c0_i32, %c0_i32_0 : i32, i32
  }
  func.func @transform_2(%arg0: i32) -> (i32, i32) {
    %c0_i32 = arith.constant 0 : i32
    %c0_i32_0 = arith.constant 0 : i32
    %c0_i32_1 = arith.constant 0 : i32
    return %c0_i32, %c0_i32_0 : i32, i32
  }
  func.func @transform_3(%arg0: i32) -> (i32, i32) {
    %c0_i32 = arith.constant 0 : i32
    %c0_i32_0 = arith.constant 0 : i32
    %c0_i32_1 = arith.constant 0 : i32
    return %c0_i32, %c0_i32_0 : i32, i32
  }
  func.func @transform_4(%arg0: i32) -> (i32, i32) {
    %c0_i32 = arith.constant 0 : i32
    %c0_i32_0 = arith.constant 0 : i32
    %c0_i32_1 = arith.constant 0 : i32
    return %c0_i32, %c0_i32_0 : i32, i32
  }
  func.func @transform_5(%arg0: i32) -> (i32, i32) {
    %c0_i32 = arith.constant 0 : i32
    %c0_i32_0 = arith.constant 0 : i32
    return %arg0, %c0_i32 : i32, i32
  }
}

</mosaic_0001>

<bundles_post_ra>
// kernel: feed_forward_net.1
= control target key start
LH: loop header
LB: loop body
LE: loop exit
PB: predicated region body
PF: predicated region fallthrough
CT: control target
= control target key end

     0   :  { %10 = vsyncpa [#allocation3], 0  ;;  %s1525_s18 = smov [#allocation2]   ;;  %s1682_s0 = inlined_call_operand.vmem [shape: f32[2,784], index: 0, kind: input, shape index: {}]   ;;  %s1683_s1 = inlined_call_operand.hbm [shape: bf16[784,256], index: 1, kind: input, shape index: {}]   ;;  %s1684_s2 = inlined_call_operand.vmem [shape: f32[1,256], index: 2, kind: input, shape index: {}]   ;;  %s1685_s3 = inlined_call_operand.vmem [shape: bf16[256,128], index: 3, kind: input, shape index: {}]   ;;  %s1686_s4 = inlined_call_operand.vmem [shape: f32[1,128], index: 4, kind: input, shape index: {}]   ;;  %s1687_s5 = inlined_call_operand.vmem [shape: bf16[2,128], index: 5, kind: output, shape index: {}]  }
   0x1   :  { %s18_s19 = sshll.u32 %s1525_s18, 4  ;;  %s1501_s22 = scalar_lea.hbm %s1683_s1, 12544  ;;  %s19_s19 = int_to_ptr.vmem [resolvable:$true] %s18_s19 }
   0x2   :  { %p1502_p0 = scmp.ne.s32.totalorder %s1683_s1, %s1501_s22  ;;  %p1505_p1 = scmp.lt.u32.totalorder %s1501_s22, %s1683_s1 }
   0x4   :  { %p1507_p2 = pnand %p1505_p1, %p1502_p0 }
   0x6   :  { %1510 = shalt.err (!%p1507_p2)
}
   0x7   :  { %s1511_s27 = scalar_lea.vmem %s19_s19, 12544  ;;  %p1516_p4 = scmp.lt.s32.totalorder %s19_s19, %s19_s19 }
   0x8   :  { %p1512_p3 = scmp.ne.s32.totalorder %s19_s19, %s1511_s27  ;;  %p1517_p5 = scmp.lt.s32.totalorder %s1511_s27, %s1511_s27 }
   0xa   :  { %p1518_p6 = por %p1517_p5, %p1516_p4 }
   0xc   :  { %p1519_p7 = pnand %p1518_p6, %p1512_p3 }
   0xe   :  { %1522 = shalt.err (!%p1519_p7)
}
   0xf   :  { %s1526_s28 = smov 128   ;;  %s1527_s29 = smov 8  }
  0x10   :  { %24 = dma.hbm_to_vmem [thread:$0]  %s1683_s1, 12544, %s19_s19, [#allocation3], %s1526_s28, %s1526_s28, %s1527_s29  }
  0x11   :  { %1523 = dma.done.wait [#allocation3], 12544  }
  0x12   :  { %1524 = vsyncadd [#allocation3], 4294954752  ;;  %v1322_v0 = vld [vmem:[#allocation2 + $0x104] ss:$8 sps:$4 sm:$0xff]   ;;  %v1324_v1 = vld [vmem:[#allocation2 + $0x100] ss:$8 sps:$4 sm:$0xff]   ;;  %v58_v13 = vlaneseq }
  0x13   :  { %781 = vmatprep.subr.bf16.mxu0 %v1322_v0  ;;  %v1325_v2 = vld [vmem:[#allocation2 + $0x114] ss:$8 sps:$4 sm:$0xff]   ;;  %v1327_v3 = vld [vmem:[#allocation2 + $0x110] ss:$8 sps:$4 sm:$0xff]   ;;  %v1328_v4 = vld [vmem:[#allocation2 + $0x124] ss:$8 sps:$4 sm:$0xff]  }
  0x14   :  { %782 = vmatpush1.bf16.msra.mxu0 %v1324_v1  ;;  %v1330_v5 = vld [vmem:[#allocation2 + $0x120] ss:$8 sps:$4 sm:$0xff]   ;;  %v1331_v6 = vld [vmem:[#allocation2 + $0x134] ss:$8 sps:$4 sm:$0xff]   ;;  %v1333_v7 = vld [vmem:[#allocation2 + $0x130] ss:$8 sps:$4 sm:$0xff]  }
  0x15   :  { %783 = vmatprep.subr.bf16.mxu0 %v1325_v2  ;;  %v1334_v8 = vld [vmem:[#allocation2 + $0x144] ss:$8 sps:$4 sm:$0xff]   ;;  %v1336_v9 = vld [vmem:[#allocation2 + $0x140] ss:$8 sps:$4 sm:$0xff]   ;;  %v1337_v10 = vld [vmem:[#allocation2 + $0x154] ss:$8 sps:$4 sm:$0xff]  }
  0x16   :  { %v1528_v11 = vmov 1983009808   ;;  %v1339_v14 = vld [vmem:[#allocation2 + $0x150] ss:$8 sps:$4 sm:$0xff]   ;;  %v1364_v15 = vld [vmem:[#allocation2 + $0x4] ss:$8 sps:$4 sm:$0xff]  }
  0x17   :  { %v56_v12 = vunpack.c.l.s4 %v1528_v11  ;;  %v1366_v16 = vld [vmem:[#allocation2] ss:$8 sps:$4 sm:$0xff]   ;;  %v1340_v17 = vld [vmem:[#allocation2 + $0x164] ss:$8 sps:$4 sm:$0xff]   ;;  %v1573_v19 = vshrl.u32 %v58_v13, 7  ;;  %740 = vmatprep.subr.bf16.mxu1 %v1364_v15  ;;  %vm736_vm0 = vcmask 130048  }
  0x18   :  { %784 = vmatpush1.bf16.msra.mxu0 %v1327_v3  ;;  %741 = vmatpush1.bf16.msra.mxu1 %v1366_v16  ;;  %v1370_v20 = vld [vmem:[#allocation2 + $0x14] ss:$8 sps:$4 sm:$0xff]   ;;  %v1372_v21 = vld [vmem:[#allocation2 + $0x10] ss:$8 sps:$4 sm:$0xff]   ;;  %v1342_v22 = vld [vmem:[#allocation2 + $0x160] ss:$8 sps:$4 sm:$0xff]  }
  0x19   :  { %785 = vmatprep.subr.bf16.mxu0 %v1328_v4  ;;  %v57_v18 = vunpack.c.0.s8 %v56_v12  ;;  %v1343_v23 = vld [vmem:[#allocation2 + $0x174] ss:$8 sps:$4 sm:$0xff]   ;;  %742 = vmatprep.subr.bf16.mxu1 %v1370_v20  ;;  %v1376_v24 = vld [vmem:[#allocation2 + $0x24] ss:$8 sps:$4 sm:$0xff]   ;;  %v1345_v26 = vld [vmem:[#allocation2 + $0x170] ss:$8 sps:$4 sm:$0xff]  }
  0x1a   :  { %v1378_v27 = vld [vmem:[#allocation2 + $0x20] ss:$8 sps:$4 sm:$0xff]   ;;  %v1379_v28 = vld [vmem:[%s1682_s0 + $0x4] ss:$14 sps:$4 sm:$0xff]  }
  0x1b   :  { %v1576_v25 = vsub.s32 %v57_v18, %v1573_v19  ;;  %v1381_v29 = vld [vmem:[%s1682_s0 + $0x20] ss:$14 sps:$4 sm:$0xff]   ;;  %v1386_v33 = vld [vmem:[#allocation2 + $0x34] ss:$8 sps:$4 sm:$0xff]  }
  0x1c   :  { %786 = vmatpush1.bf16.msra.mxu0 %v1330_v5  ;;  %743 = vmatpush1.bf16.msra.mxu1 %v1372_v21  ;;  %v1346_v30 = vld [vmem:[#allocation2 + $0x184] ss:$8 sps:$4 sm:$0xff]   ;;  %v1388_v34 = vld [vmem:[#allocation2 + $0x30] ss:$8 sps:$4 sm:$0xff]   ;;  %v1348_v35 = vld [vmem:[#allocation2 + $0x180] ss:$8 sps:$4 sm:$0xff]  }
  0x1d   :  { %787 = vmatprep.subr.bf16.mxu0 %v1331_v6  ;;  %744 = vmatprep.subr.bf16.mxu1 %v1376_v24  ;;  %v1585_v31 = vrot.slane %v1379_v28, %v1576_v25  ;;  %v82_v32 = vrot.slane %v1381_v29, %v1576_v25  ;;  %v1349_v37 = vld [vmem:[#allocation2 + $0x194] ss:$8 sps:$4 sm:$0xff]   ;;  %v1392_v38 = vld [vmem:[#allocation2 + $0x44] ss:$8 sps:$4 sm:$0xff]   ;;  %v1351_v39 = vld [vmem:[#allocation2 + $0x190] ss:$8 sps:$4 sm:$0xff]  }
  0x1e   :  { %v1394_v41 = vld [vmem:[#allocation2 + $0x40] ss:$8 sps:$4 sm:$0xff]   ;;  %v1398_v42 = vld [vmem:[#allocation2 + $0x54] ss:$8 sps:$4 sm:$0xff]   ;;  %v1352_v43 = vld [vmem:[#allocation2 + $0x1a4] ss:$8 sps:$4 sm:$0xff]  }
  0x1f   :  { %v86_v36 = vcombine.high %v1585_v31, %v82_v32  ;;  %v1354_v44 = vld [vmem:[#allocation2 + $0x1a0] ss:$8 sps:$4 sm:$0xff]   ;;  %v1400_v45 = vld [vmem:[#allocation2 + $0x50] ss:$8 sps:$4 sm:$0xff]   ;;  %v1404_v46 = vld [vmem:[#allocation2 + $0x64] ss:$8 sps:$4 sm:$0xff]   ;;  %v85_v1 = vcombine.low %v1585_v31, %v82_v32 }
  0x20   :  { %788 = vmatpush1.bf16.msra.mxu0 %v1333_v7  ;;  %745 = vmatpush1.bf16.msra.mxu1 %v1378_v27  ;;  %v1355_v47 = vld [vmem:[#allocation2 + $0x1b4] ss:$8 sps:$4 sm:$0xff]   ;;  %v1357_v48 = vld [vmem:[#allocation2 + $0x1b0] ss:$8 sps:$4 sm:$0xff]   ;;  %v1406_v49 = vld [vmem:[#allocation2 + $0x60] ss:$8 sps:$4 sm:$0xff]  }
  0x21   :  { %789 = vmatprep.subr.bf16.mxu0 %v1334_v8  ;;  %746 = vmatprep.subr.bf16.mxu1 %v1386_v33  ;;  %v132_v40 = vpack.c.bf16 %v86_v36, %v86_v36  ;;  %v1410_v50 = vld [vmem:[#allocation2 + $0x74] ss:$8 sps:$4 sm:$0xff]   ;;  %v1358_v51 = vld [vmem:[#allocation2 + $0x1c4] ss:$8 sps:$4 sm:$0xff]   ;;  %v1360_v52 = vld [vmem:[#allocation2 + $0x1c0] ss:$8 sps:$4 sm:$0xff]   ;;  %v131_v6 = vpack.c.bf16 %v85_v1, %v85_v1 }
  0x22   :  { %v1412_v53 = vld [vmem:[#allocation2 + $0x70] ss:$8 sps:$4 sm:$0xff]   ;;  %v1416_v54 = vld [vmem:[#allocation2 + $0x84] ss:$8 sps:$4 sm:$0xff]   ;;  %v1361_v55 = vld [vmem:[#allocation2 + $0x1d4] ss:$8 sps:$4 sm:$0xff]  }
  0x23   :  { %813 = vmatprep.mubr.bf16.mxu0 %v132_v40  ;;  %v1363_v56 = vld [vmem:[#allocation2 + $0x1d0] ss:$8 sps:$4 sm:$0xff]   ;;  %v1418_v57 = vld [vmem:[#allocation2 + $0x80] ss:$8 sps:$4 sm:$0xff]   ;;  %v1422_v58 = vld [vmem:[#allocation2 + $0x94] ss:$8 sps:$4 sm:$0xff]  }
  0x24   :  { %790 = vmatpush1.bf16.msra.mxu0 %v1336_v9  ;;  %747 = vmatpush1.bf16.msra.mxu1 %v1388_v34  ;;  %v1367_v59 = vld [vmem:[#allocation2 + $0x1e4] ss:$8 sps:$4 sm:$0xff]   ;;  %v1369_v60 = vld [vmem:[#allocation2 + $0x1e0] ss:$8 sps:$4 sm:$0xff]   ;;  %v1424_v61 = vld [vmem:[#allocation2 + $0x90] ss:$8 sps:$4 sm:$0xff]  }
  0x25   :  { %791 = vmatprep.subr.bf16.mxu0 %v1337_v10  ;;  %748 = vmatprep.subr.bf16.mxu1 %v1392_v38  ;;  %v1428_v62 = vld [vmem:[#allocation2 + $0xa4] ss:$8 sps:$4 sm:$0xff]   ;;  %v1373_v63 = vld [vmem:[#allocation2 + $0x1f4] ss:$8 sps:$4 sm:$0xff]   ;;  %v1375_v0 = vld [vmem:[#allocation2 + $0x1f0] ss:$8 sps:$4 sm:$0xff]  }
  0x26   :  { %v1430_v2 = vld [vmem:[#allocation2 + $0xa0] ss:$8 sps:$4 sm:$0xff]   ;;  %v1434_v3 = vld [vmem:[#allocation2 + $0xb4] ss:$8 sps:$4 sm:$0xff]   ;;  %v1385_v4 = vld [vmem:[#allocation2 + $0x204] ss:$8 sps:$4 sm:$0xff]  }
  0x27   :  { %v1383_v5 = vld [vmem:[#allocation2 + $0x200] ss:$8 sps:$4 sm:$0xff]   ;;  %v1436_v7 = vld [vmem:[#allocation2 + $0xb0] ss:$8 sps:$4 sm:$0xff]   ;;  %v1440_v8 = vld [vmem:[#allocation2 + $0xc4] ss:$8 sps:$4 sm:$0xff]  }
  0x28   :  { %792 = vmatpush1.bf16.msra.mxu0 %v1339_v14  ;;  %749 = vmatpush1.bf16.msra.mxu1 %v1394_v41  ;;  %v1464_v9 = vld [vmem:[%s1682_s0] ss:$14 sps:$4 sm:$0xff]   ;;  %v1465_v10 = vld [vmem:[%s1682_s0 + $0x1c] ss:$14 sps:$4 sm:$0xff]  }
  0x29   :  { %793 = vmatprep.subr.bf16.mxu0 %v1340_v17  ;;  %750 = vmatprep.subr.bf16.mxu1 %v1398_v42  ;;  %v1391_v11 = vld [vmem:[#allocation2 + $0x214] ss:$8 sps:$4 sm:$0xff]   ;;  %v61_v12 = vrot.slane %v1464_v9, %v1576_v25  ;;  %v75_v13 = vrot.slane %v1465_v10, %v1576_v25  ;;  %v1389_v14 = vld [vmem:[#allocation2 + $0x210] ss:$8 sps:$4 sm:$0xff]   ;;  %v1442_v15 = vld [vmem:[#allocation2 + $0xc0] ss:$8 sps:$4 sm:$0xff]  }
  0x2a   :  { %v1397_v16 = vld [vmem:[#allocation2 + $0x224] ss:$8 sps:$4 sm:$0xff]   ;;  %v1446_v17 = vld [vmem:[#allocation2 + $0xd4] ss:$8 sps:$4 sm:$0xff]   ;;  %v1448_v24 = vld [vmem:[#allocation2 + $0xd0] ss:$8 sps:$4 sm:$0xff]  }
  0x2b   :  { %v84_v18 = vcombine.high %v61_v12, %v75_v13  ;;  %v1475_v21 = vld [vmem:[%s1682_s0 + $0x8] ss:$14 sps:$4 sm:$0xff]   ;;  %v1409_v32 = vld [vmem:[#allocation2 + $0x244] ss:$8 sps:$4 sm:$0xff]   ;;  %v83_v40 = vcombine.low %v61_v12, %v75_v13 }
  0x2c   :  { %794 = vmatpush1.bf16.msra.mxu0 %v1342_v22  ;;  %751 = vmatpush1.bf16.msra.mxu1 %v1400_v45  ;;  %v1478_v22 = vld [vmem:[%s1682_s0 + $0x24] ss:$14 sps:$4 sm:$0xff]   ;;  %v1605_v27 = vrot.slane %v1475_v21, %v1576_v25  ;;  %v1454_v33 = vld [vmem:[#allocation2 + $0xe0] ss:$8 sps:$4 sm:$0xff]  }
  0x2d   :  { %795 = vmatprep.subr.bf16.mxu0 %v1343_v23  ;;  %752 = vmatprep.subr.bf16.mxu1 %v1404_v46  ;;  %v130_v20 = vpack.c.bf16 %v84_v18, %v84_v18  ;;  %v1395_v23 = vld [vmem:[#allocation2 + $0x220] ss:$8 sps:$4 sm:$0xff]   ;;  %v1608_v28 = vrot.slane %v1478_v22, %v1576_v25  ;;  %v1403_v29 = vld [vmem:[#allocation2 + $0x234] ss:$8 sps:$4 sm:$0xff]   ;;  %v1460_v38 = vld [vmem:[#allocation2 + $0xf0] ss:$8 sps:$4 sm:$0xff]   ;;  %v129_v45 = vpack.c.bf16 %v83_v40, %v83_v40 }
  0x2e   :  { %v1458_v34 = vld [vmem:[#allocation2 + $0xf4] ss:$8 sps:$4 sm:$0xff]   ;;  %v1471_v41 = vld [vmem:[#allocation2 + $0x304] ss:$8 sps:$4 sm:$0xff]   ;;  %v1443_v1 = vld [vmem:[#allocation2 + $0x2a0] ss:$8 sps:$4 sm:$0xff]  }
  0x2f   :  { %772 = vmatprep.mubr.bf16.mxu1 %v130_v20  ;;  %v120_v31 = vcombine.high %v1605_v27, %v1608_v28  ;;  %v1480_v36 = vld [vmem:[%s1682_s0 + $0x28] ss:$14 sps:$4 sm:$0x33]   ;;  %v1472_v12 = vld [vmem:[#allocation2 + $0x2f0] ss:$8 sps:$4 sm:$0xff]  }
  0x30   :  { %796 = vmatpush1.bf16.msra.mxu0 %v1345_v26  ;;  %753 = vmatpush1.bf16.msra.mxu1 %v1406_v49  ;;  %v1452_v26 = vld [vmem:[#allocation2 + $0xe4] ss:$8 sps:$4 sm:$0xff]   ;;  %v1415_v42 = vld [vmem:[#allocation2 + $0x254] ss:$8 sps:$4 sm:$0xff]   ;;  %v1466_v9 = vld [vmem:[#allocation2 + $0x2e0] ss:$8 sps:$4 sm:$0xff]  }
  0x31   :  { %797 = vmatprep.subr.bf16.mxu0 %v1346_v30  ;;  %754 = vmatprep.subr.bf16.mxu1 %v1410_v50  ;;  %v1401_v30 = vld [vmem:[#allocation2 + $0x230] ss:$8 sps:$4 sm:$0xff]   ;;  %v1421_v49 = vld [vmem:[#allocation2 + $0x264] ss:$8 sps:$4 sm:$0xff]   ;;  %v1474_v10 = vld [vmem:[#allocation2 + $0x2f4] ss:$8 sps:$4 sm:$0xff]  }
  0x32   :  { %v1491_v18 = vld [vmem:[%s1685_s3 + $0x68] sm:$0xff]   ;;  %v1493_v21 = vld [vmem:[%s1685_s3 + $0x70] sm:$0xff]  }
  0x33   :  { %v1492_v20 = vld [vmem:[%s1685_s3 + $0x28] sm:$0xff]   ;;  %v1494_v22 = vld [vmem:[%s1685_s3 + $0x30] sm:$0xff]  }
  0x34   :  { %798 = vmatpush1.bf16.msra.mxu0 %v1348_v35  ;;  %755 = vmatpush1.bf16.msra.mxu1 %v1412_v53  ;;  %v1477_v35 = vld [vmem:[%s1682_s0 + $0xc] ss:$14 sps:$4 sm:$0x33]   ;;  %v1427_v53 = vld [vmem:[#allocation2 + $0x274] ss:$8 sps:$4 sm:$0xff]  }
  0x35   :  { %799 = vmatprep.subr.bf16.mxu0 %v1349_v37  ;;  %756 = vmatprep.subr.bf16.mxu1 %v1416_v54  ;;  %v134_v37 = vpack.c.bf16 %v120_v31, %v120_v31  ;;  %v104_v46 = vrot.slane %v1477_v35, %v1576_v25  ;;  %v1482_v54 = vld [vmem:[%s1685_s3] sm:$0xff]  }
  0x36   :  { %v234_v35 = vld [vmem:[%s1684_s2] sm:$0x3] }
  0x38   :  { %800 = vmatpush1.bf16.msra.mxu0 %v1351_v39  ;;  %757 = vmatpush1.bf16.msra.mxu1 %v1418_v57  ;;  %v1407_v39 = vld [vmem:[#allocation2 + $0x240] ss:$8 sps:$4 sm:$0xff]   ;;  %v1433_v57 = vld [vmem:[#allocation2 + $0x284] ss:$8 sps:$4 sm:$0xff]  }
  0x39   :  { %801 = vmatprep.subr.bf16.mxu0 %v1352_v43  ;;  %758 = vmatprep.subr.bf16.mxu1 %v1422_v58  ;;  %v1469_v43 = vld [vmem:[#allocation2 + $0x300] ss:$8 sps:$4 sm:$0xff]  }
  0x3a   :  { %v1484_v58 = vld [vmem:[%s1685_s3 + $0x8] sm:$0xff]  }
  0x3c   :  { %802 = vmatpush1.bf16.msra.mxu0 %v1354_v44  ;;  %759 = vmatpush1.bf16.msra.mxu1 %v1424_v61  ;;  %v1413_v44 = vld [vmem:[#allocation2 + $0x250] ss:$8 sps:$4 sm:$0xff]   ;;  %v1439_v61 = vld [vmem:[#allocation2 + $0x294] ss:$8 sps:$4 sm:$0xff]  }
  0x3d   :  { %803 = vmatprep.subr.bf16.mxu0 %v1355_v47  ;;  %760 = vmatprep.subr.bf16.mxu1 %v1428_v62  ;;  %v118_v47 = vrot.slane %v1480_v36, %v1576_v25  ;;  %v1486_v62 = vld [vmem:[%s1685_s3 + $0x10] sm:$0xff]   ;;  %v242_v36 = vsub.s32 1, %v1573_v19 }
  0x3f   :  { %v121_v50 = vcombine.low %v104_v46, %v118_v47 }
  0x40   :  { %804 = vmatpush1.bf16.msra.mxu0 %v1357_v48  ;;  %761 = vmatpush1.bf16.msra.mxu1 %v1430_v2  ;;  %v1481_v48 = vld [vmem:[%s1685_s3 + $0x40] sm:$0xff]   ;;  %v1451_v2 = vld [vmem:[#allocation2 + $0x2b4] ss:$8 sps:$4 sm:$0xff]  }
  0x41   :  { %805 = vmatprep.subr.bf16.mxu0 %v1358_v51  ;;  %762 = vmatprep.subr.bf16.mxu1 %v1434_v3  ;;  %v1529_v51 = vmov 0   ;;  %v135_v25 = vpack.c.bf16 %v121_v50, %v121_v50  ;;  %v1449_v3 = vld [vmem:[#allocation2 + $0x2b0] ss:$8 sps:$4 sm:$0xff]  }
  0x44   :  { %806 = vmatpush1.bf16.msra.mxu0 %v1360_v52  ;;  %763 = vmatpush1.bf16.msra.mxu1 %v1436_v7  ;;  %v1419_v52 = vld [vmem:[#allocation2 + $0x260] ss:$8 sps:$4 sm:$0xff]   ;;  %v1461_v7 = vld [vmem:[#allocation2 + $0x2d0] ss:$8 sps:$4 sm:$0xff]  }
  0x45   :  { %807 = vmatprep.subr.bf16.mxu0 %v1361_v55  ;;  %764 = vmatprep.subr.bf16.mxu1 %v1440_v8  ;;  %v1425_v55 = vld [vmem:[#allocation2 + $0x270] ss:$8 sps:$4 sm:$0xff]   ;;  %v1468_v8 = vld [vmem:[#allocation2 + $0x2e4] ss:$8 sps:$4 sm:$0xff]  }
  0x48   :  { %808 = vmatpush1.bf16.msra.mxu0 %v1363_v56  ;;  %765 = vmatpush1.bf16.msra.mxu1 %v1442_v15  ;;  %v1483_v56 = vld [vmem:[%s1685_s3 + $0x48] sm:$0xff]   ;;  %v1488_v15 = vld [vmem:[%s1685_s3 + $0x18] sm:$0xff]  }
  0x49   :  { %809 = vmatprep.subr.bf16.mxu0 %v1367_v59  ;;  %766 = vmatprep.subr.bf16.mxu1 %v1446_v17  ;;  %v1431_v59 = vld [vmem:[#allocation2 + $0x280] ss:$8 sps:$4 sm:$0xff]  }
  0x4a   :  { %v1490_v17 = vld [vmem:[%s1685_s3 + $0x20] sm:$0xff]  }
  0x4c   :  { %810 = vmatpush1.bf16.msra.mxu0 %v1369_v60  ;;  %767 = vmatpush1.bf16.msra.mxu1 %v1448_v24  ;;  %v1485_v60 = vld [vmem:[%s1685_s3 + $0x50] sm:$0xff]   ;;  %v1496_v24 = vld [vmem:[%s1685_s3 + $0x38] sm:$0xff]  }
  0x4d   :  { %811 = vmatprep.subr.bf16.mxu0 %v1373_v63  ;;  %768 = vmatprep.subr.bf16.mxu1 %v1452_v26  ;;  %v1437_v63 = vld [vmem:[#allocation2 + $0x290] ss:$8 sps:$4 sm:$0xff]  }
  0x50   :  { %812 = vmatpush1.bf16.msra.mxu0 %v1375_v0  ;;  %769 = vmatpush1.bf16.msra.mxu1 %v1454_v33  ;;  %v1445_v0 = vld [vmem:[#allocation2 + $0x2a4] ss:$8 sps:$4 sm:$0xff]  }
  0x51   :  { %822 = vmatprep.subr.bf16.mxu0 %v1385_v4  ;;  %770 = vmatprep.subr.bf16.mxu1 %v1458_v34  ;;  %v1457_v4 = vld [vmem:[#allocation2 + $0x2c4] ss:$8 sps:$4 sm:$0xff]   ;;  %v238_v34 = vsub.s32 0, %v1573_v19 }
  0x53   :  { %814 = vmatmul.mubr.bf16.vlgmr.msra.gmra.mrb[0].mxu0 %v131_v6  ;;  %v1463_v6 = vld [vmem:[#allocation2 + $0x2d4] ss:$8 sps:$4 sm:$0xff]  }
  0x54   :  { %823 = vmatpush1.bf16.msra.mxu0 %v1383_v5  ;;  %854 = vmatprep.mubr.bf16.mxu0 %v134_v37  ;;  %v1455_v5 = vld [vmem:[#allocation2 + $0x2c0] ss:$8 sps:$4 sm:$0xff]   ;;  %v239_v37 = vrot.slane %v234_v35, %v238_v34 }
  0x55   :  { %824 = vmatprep.subr.bf16.mxu0 %v1391_v11  ;;  %771 = vmatpush1.bf16.msra.mxu1 %v1460_v38  ;;  %v119_v11 = vcombine.low %v1605_v27, %v1608_v28  ;;  %v243_v38 = vrot.slane %v234_v35, %v242_v36 }
  0x56   :  { %863 = vmatprep.subr.bf16.mxu1 %v1471_v41 }
  0x57   :  { %v133_v13 = vpack.c.bf16 %v119_v11, %v119_v11 }
  0x58   :  { %825 = vmatpush1.bf16.msra.mxu0 %v1389_v14  ;;  %773 = vmatmul.mubr.bf16.vlgmr.msra.gmra.mrb[0].mxu1 %v129_v45  ;;  %v1487_v14 = vld [vmem:[%s1685_s3 + $0x58] sm:$0xff]  }
  0x59   :  { %826 = vmatprep.subr.bf16.mxu0 %v1397_v16  ;;  %864 = vmatpush1.bf16.msra.mxu1 %v1469_v43  ;;  %v1489_v16 = vld [vmem:[%s1685_s3 + $0x60] sm:$0xff]  }
  0x5a   :  { %895 = vmatprep.mubr.bf16.mxu1 %v1529_v51  ;;  %1284 = vmatprep.subr.bf16.mxu1 %v1481_v48 }
  0x5c   :  { %827 = vmatpush1.bf16.msra.mxu0 %v1395_v23  ;;  %v1495_v23 = vld [vmem:[%s1685_s3 + $0x78] sm:$0xff]  }
  0x5d   :  { %828 = vmatprep.subr.bf16.mxu0 %v1403_v29 }
  0x60   :  { %829 = vmatpush1.bf16.msra.mxu0 %v1401_v30  ;;  %1264 = vmatmul.mubr.msk.bf16.vlgmr.msra.gmra.mrb[4].mxu1 %vm736_vm0, %v135_v25 }
  0x61   :  { %830 = vmatprep.subr.bf16.mxu0 %v1409_v32  ;;  %1285 = vmatpush3.bf16.msra.mxu1 %v1482_v54  ;;  %v1265_v54 = vld [vmem:[%s1686_s4] ss:$0 sm:$0xff] }
  0x62   :  { %1286 = vmatprep.subr.bf16.mxu1 %v1483_v56 }
  0x64   :  { %831 = vmatpush1.bf16.msra.mxu0 %v1407_v39 }
  0x65   :  { %832 = vmatprep.subr.bf16.mxu0 %v1415_v42  ;;  %1287 = vmatpush3.bf16.msra.mxu1 %v1484_v58 }
  0x66   :  { %1288 = vmatprep.subr.bf16.mxu1 %v1485_v60 }
  0x68   :  { %833 = vmatpush1.bf16.msra.mxu0 %v1413_v44 }
  0x69   :  { %834 = vmatprep.subr.bf16.mxu0 %v1421_v49  ;;  %1289 = vmatpush3.bf16.msra.mxu1 %v1486_v62 }
  0x6a   :  { %1290 = vmatprep.subr.bf16.mxu1 %v1487_v14 }
  0x6c   :  { %835 = vmatpush1.bf16.msra.mxu0 %v1419_v52 }
  0x6d   :  { %836 = vmatprep.subr.bf16.mxu0 %v1427_v53  ;;  %1291 = vmatpush3.bf16.msra.mxu1 %v1488_v15 }
  0x6e   :  { %1292 = vmatprep.subr.bf16.mxu1 %v1489_v16 }
  0x70   :  { %837 = vmatpush1.bf16.msra.mxu0 %v1425_v55 }
  0x71   :  { %838 = vmatprep.subr.bf16.mxu0 %v1433_v57  ;;  %1293 = vmatpush3.bf16.msra.mxu1 %v1490_v17 }
  0x72   :  { %1294 = vmatprep.subr.bf16.mxu1 %v1491_v18 }
  0x74   :  { %839 = vmatpush1.bf16.msra.mxu0 %v1431_v59 }
  0x75   :  { %840 = vmatprep.subr.bf16.mxu0 %v1439_v61  ;;  %1295 = vmatpush3.bf16.msra.mxu1 %v1492_v20 }
  0x76   :  { %1296 = vmatprep.subr.bf16.mxu1 %v1493_v21 }
  0x78   :  { %841 = vmatpush1.bf16.msra.mxu0 %v1437_v63 }
  0x79   :  { %842 = vmatprep.subr.bf16.mxu0 %v1445_v0  ;;  %1297 = vmatpush3.bf16.msra.mxu1 %v1494_v22  ;;  %v1530_v0 = vmov 1966171168  }
  0x7a   :  { %1298 = vmatprep.subr.bf16.mxu1 %v1495_v23 }
  0x7c   :  { %843 = vmatpush1.bf16.msra.mxu0 %v1443_v1  ;;  %v1095_v1 = vunpack.c.l.s4 %v1530_v0 }
  0x7d   :  { %844 = vmatprep.subr.bf16.mxu0 %v1451_v2  ;;  %1299 = vmatpush3.bf16.msra.mxu1 %v1496_v24 }
  0x7e   :  { %v1096_v2 = vunpack.c.0.s8 %v1095_v1 }
  0x80   :  { %845 = vmatpush1.bf16.msra.mxu0 %v1449_v3 }
  0x81   :  { %846 = vmatprep.subr.bf16.mxu0 %v1457_v4  ;;  %v1099_v4 = vsub.s32 %v1096_v2, %v1573_v19 }
  0x84   :  { %847 = vmatpush1.bf16.msra.mxu0 %v1455_v5 }
  0x85   :  { %848 = vmatprep.subr.bf16.mxu0 %v1463_v6 }
  0x88   :  { %849 = vmatpush1.bf16.msra.mxu0 %v1461_v7 }
  0x89   :  { %850 = vmatprep.subr.bf16.mxu0 %v1468_v8 }
  0x8c   :  { %851 = vmatpush1.bf16.msra.mxu0 %v1466_v9 }
  0x8d   :  { %852 = vmatprep.subr.bf16.mxu0 %v1474_v10 }
  0x90   :  { %853 = vmatpush1.bf16.msra.mxu0 %v1472_v12 }
  0x93   :  { %855 = vmatmul.mubr.bf16.vlgmr.msra.gmra.mrb[0].mxu0 %v133_v13 }
 0x12b   :  { %v774_v26 = vpop.f32.mrb[0].mxu1 }
 0x12c   :  { %v776_v27 = vpop.f32.mrb[1].mxu1  ;;  %v775_v39 = vadd.f32 %v774_v26, %v239_v37 }
 0x12d   :  { %v778_v28 = vpop.f32.mrb[2].mxu1  ;;  %v777_v40 = vadd.f32 %v776_v27, %v243_v38 }
 0x12e   :  { %v779_v29 = vpop.f32.mrb[3].mxu1 }
 0x133   :  { %v897_v30 = vpop.f32.mrb[4].mxu1 }
 0x134   :  { %v899_v31 = vpop.f32.mrb[5].mxu1 }
 0x135   :  { %v901_v32 = vpop.f32.mrb[6].mxu1 }
 0x136   :  { %v902_v33 = vpop.f32.mrb[7].mxu1 }
 0x166   :  { %v856_v41 = vpop.f32.mrb[0].mxu0 }
 0x167   :  { %v1307_v42 = vadd.f32 %v856_v41, %v775_v39  ;;  %v858_v43 = vpop.f32.mrb[1].mxu0 }
 0x168   :  { %v1310_v44 = vadd.f32 %v858_v43, %v777_v40  ;;  %v860_v45 = vpop.f32.mrb[2].mxu0 }
 0x169   :  { %v1308_v46 = vadd.f32 %v1307_v42, %v897_v30  ;;  %v861_v47 = vpop.f32.mrb[3].mxu0 }
 0x16a   :  { %v1311_v48 = vadd.f32 %v1310_v44, %v899_v31 }
 0x16b   :  { %v904_v49 = vmax.f32 %v1308_v46, 0.0 }
 0x16c   :  { %v905_v50 = vmax.f32 %v1311_v48, 0.0 }
 0x16d   :  { %v906_v52 = vpack.c.bf16 %v904_v49, %v904_v49 }
 0x16e   :  { %v907_v51 = vpack.c.bf16 %v905_v50, %v905_v50 }
 0x170   :  { %1075 = vmatprep.mubr.bf16.mxu1 %v907_v51 }
 0x171   :  { %1076 = vmatmul.mubr.bf16.vlgmr.msra.gmra.mrb[8].mxu1 %v906_v52 }
 0x244   :  { %v1300_v53 = vpop.f32.mrb[8].mxu1 }
 0x245   :  { %v1301_v25 = vpop.f32.mrb[9].mxu1 }
 0x246   :  { %v1302_v55 = vadd.f32 %v1301_v25, %v1300_v53  ;;  %v1303_v56 = vpop.f32.mrb[10].mxu1 }
 0x247   :  { %v1304_v57 = vpop.f32.mrb[11].mxu1 }
 0x248   :  { %v1078_v58 = vadd.f32 %v1302_v55, %v1265_v54 }
 0x24a   :  { %1083 = vmax.xlane.f32.xlu0 %v1078_v58 }
 0x2d7   :  { %v1084_v59 = vpop.xlane.xlu0 %1083 }
 0x2d8   :  { %v1085_v60 = vsub.f32 %v1078_v58, %v1084_v59 }
 0x2da   :  { %v1086_v61 = vmul.f32 1.442695, %v1085_v60 }
 0x2dc   :  { %1497 = vpow2.f32 %v1086_v61 }
 0x2e6   :  { %v1498_v62 = vpop.eup %1497 }
 0x2e7   :  { %1088 = vadd.xlane.f32.xlu0 %v1498_v62 }
 0x374   :  { %v1089_v63 = vpop.xlane.xlu0 %1088 }
 0x375   :  { %1499 = vrcp.f32 %v1089_v63 }
 0x37f   :  { %v1500_v3 = vpop.eup %1499 }
 0x380   :  { %v1091_v5 = vmul.f32 %v1500_v3, %v1498_v62 }
 0x382   :  { %v1092_v6 = vpack.c.bf16 %v1091_v5, %v1091_v5 }
 0x384   :  { %v1100_v7 = vrot.slane %v1092_v6, %v1099_v4 }
 0x386   :  { %1282 = vst.sshfl [vmem:[#allocation4] sm:$0x1 pattern:$0x73625140] %v1100_v7 }
 0x38d   :  { %v1143_v8 = vld [vmem:[#allocation4] sm:$0x1] }
 0x38e   :  { %1144 = vst [vmem:[%s1687_s5] sm:$0x1] %v1143_v8 }
 0x38f   :  { %1161 = vsyncpa [#allocation3], 1 }

</bundles_post_ra>
